<compile_context>
chip_gen: v7x
topology: tpu7x:2x2x1
jax: 0.10.0
libtpu: 0.0.40
codegen_flags: <defaults>
</compile_context>

<pallas_src>
import math

import jax
import jax.numpy as jnp
from jax.experimental import pallas as pl
from jax.experimental.pallas import tpu as pltpu


def _cdiv(a, b):
    return -(-a // b)


def _round_up(a, m):
    return _cdiv(a, m) * m


def _pick_tv(V, max_tv=4096):
    """Vocab tile: a multiple-of-128 divisor of V (no overhang), or full V."""
    if V % 128 != 0:
        # Block dim == full array dim is allowed even when not 128-divisible.
        return V
    t = min(max_tv, V)
    t = (t // 128) * 128
    while t >= 128:
        if V % t == 0:
            return t
        t -= 128
    return 128


def make_label_smoothing_kernel(N, tv, tm, steps, padding_idx, smoothing, size,
                                collapse):
    confidence = 1.0 - smoothing
    smooth_val = (smoothing / (size - 2)) if size > 2 else 0.0
    # Constant-fold the logs (guard smoothing==0 / smoothing==1 against -inf*0 NaNs).
    log_conf = math.log(confidence) if confidence > 0.0 else 0.0
    log_smooth = math.log(smooth_val) if smooth_val > 0.0 else 0.0
    conf_s = confidence                 # scalar coefficient on x at the target col
    conf_a = confidence * log_conf      # scalar constant term at the target col

    def kernel(x_ref, tgt_ref, out_ref, acc_ref):
        c = pl.program_id(0)       # core split
        vb = pl.program_id(1)      # vocab block
        i = pl.program_id(2)       # row step (reduction axis, innermost)
        n_i = pl.num_programs(2)

        @pl.when(i == 0)
        def _():
            acc_ref[...] = jnp.zeros_like(acc_ref)

        x = x_ref[...].astype(jnp.float32)        # (tm, tv) log-probs
        tgt = tgt_ref[...]                        # (tm, 1) int32

        # Per-column coefficients, built on a (1, tv) row only (cost ~1/tm per elem).
        col = jax.lax.broadcasted_iota(jnp.int32, (1, tv), 1) + vb * tv
        col_ok = col != padding_idx               # no vocab overhang: col < V always
        s_col = jnp.where(col_ok, jnp.float32(smooth_val), jnp.float32(0.0))
        a_col = jnp.where(col_ok, jnp.float32(smooth_val * log_smooth),
                          jnp.float32(0.0))

        # Row validity: real row (global index < N) and not a padding target.
        row = jax.lax.broadcasted_iota(jnp.int32, (tm, 1), 0)
        global_row = (c * steps + i) * tm + row
        row_ok = jnp.logical_and(global_row < N, tgt != padding_idx)   # (tm, 1)

        is_tgt = col == tgt                       # (tm, tv) broadcast compare

        # kl = td * (log(td) - x), td in {smooth_val, confidence}, logs precomputed.
        kl_smooth = a_col - s_col * x                                   # (tm, tv)
        kl_conf = jnp.float32(conf_a) - jnp.float32(conf_s) * x         # (tm, tv)
        kl = jnp.where(is_tgt, kl_conf, kl_smooth)
        # NaN-safe select (garbage rows in overhanging edge blocks are discarded).
        kl = jnp.where(row_ok, kl, jnp.float32(0.0))

        # Row reduce in groups of 8 -> (8, tv); layout-preserving reshape, VALU adds.
        acc_ref[...] += jnp.sum(kl.reshape(tm // 8, 8, tv), axis=0)

        @pl.when(i == n_i - 1)
        def _():
            acc = acc_ref[...]
            if collapse:
                # Collapse lanes to 128 with lane-aligned static slices (no relayout).
                out = acc[:, 0:128]
                for k in range(1, tv // 128):
                    out = out + acc[:, k * 128:(k + 1) * 128]
            else:
                out = acc
            out_ref[...] = out[None, None, :, :]

    return kernel


def label_smoothing_loss(x, target, *, size, padding_idx, smoothing,
                         tm=None, n_cores=2, vmem_limit_bytes=32 << 20):
    N, V = x.shape
    assert V == size
    assert size != 2, "size == 2 divides by zero in smoothing/(size-2)"

    tgt2d = target.astype(jnp.int32).reshape(N, 1)

    tv = _pick_tv(V)
    n_vb = V // tv
    collapse = (tv % 128 == 0)
    out_w = 128 if collapse else tv

    elem_bytes = jnp.dtype(x.dtype).itemsize
    if tm is None:
        # Budget the working set: double-buffered x, lane-padded (tm,128) target
        # buffers, ~4 f32 full-block temporaries (upcast, kl_smooth/conf, select),
        # plus the resident accumulator/output slabs.  ~20 MiB fits every
        # generation's scoped VMEM (v7x: 32 MiB default scope / 64 MiB physical).
        budget = 20 << 20
        temps = 4
        fixed = 8 * tv * 4 + 2 * 8 * out_w * 4
        per_row = tv * (2 * elem_bytes + temps * 4) + 2 * 128 * 4
        tm = (budget - fixed) // per_row
        tm = max(8, min(512, (tm // 8) * 8))
    # Don't exceed one core's share of rows (avoids pathological masked overhang).
    rows_per_core = _cdiv(N, n_cores)
    tm = max(8, min(tm, _round_up(rows_per_core, 8)))

    nrb = _cdiv(N, tm)               # total row blocks
    steps = _cdiv(nrb, n_cores)      # row blocks per core
    max_rb = nrb - 1

    kernel = make_label_smoothing_kernel(N, tv, tm, steps, padding_idx,
                                         smoothing, size, collapse)

    def x_map(c, vb, i):
        # Clamp fully-out-of-range row blocks of the last core; their rows are
        # masked in-kernel via the (unclamped) global-row < N check.
        return (jnp.minimum(c * steps + i, max_rb), vb)

    def t_map(c, vb, i):
        return (jnp.minimum(c * steps + i, max_rb), 0)

    partials = pl.pallas_call(
        kernel,
        out_shape=jax.ShapeDtypeStruct((n_cores, n_vb, 8, out_w), jnp.float32),
        grid_spec=pltpu.PrefetchScalarGridSpec(
            num_scalar_prefetch=0,
            grid=(n_cores, n_vb, steps),
            in_specs=[
                pl.BlockSpec((tm, tv), x_map),
                pl.BlockSpec((tm, 1), t_map),
            ],
            # Output block depends only on (core, vblock) -> stays resident across
            # the row axis; written once at the last row step.
            out_specs=pl.BlockSpec((1, 1, 8, out_w), lambda c, vb, i: (c, vb, 0, 0)),
            scratch_shapes=[pltpu.VMEM((8, tv), jnp.float32)],
        ),
        compiler_params=pltpu.CompilerParams(
            dimension_semantics=("parallel", "arbitrary", "arbitrary"),
            vmem_limit_bytes=vmem_limit_bytes),
    )(x, tgt2d)

    # Single tiny cross-lane reduce, done once outside the kernel.
    return jnp.sum(partials)


def label_smoothing_ref(x, target, *, size, padding_idx, smoothing):
    """Pure-JAX reference mirroring the PyTorch module."""
    N, V = x.shape
    td = jnp.full((N, V), smoothing / (size - 2), dtype=jnp.float32)
    td = td.at[jnp.arange(N), target].set(1.0 - smoothing)
    td = td.at[:, padding_idx].set(0.0)
    td = jnp.where((target == padding_idx)[:, None], 0.0, td)
    kl = jnp.where(td > 0.0, td * (jnp.log(td) - x.astype(jnp.float32)), 0.0)
    return jnp.sum(kl)


if __name__ == "__main__":
    key = jax.random.PRNGKey(0)
    N, V = 16, 32              # 16 tokens, vocab size 32
    size = V
    padding_idx = 0
    smoothing = 0.1

    k1, k2 = jax.random.split(key)
    logits = jax.random.normal(k1, (N, V), dtype=jnp.float32)
    x = jax.nn.log_softmax(logits, axis=-1)          # module expects log-probs
    target = jax.random.randint(k2, (N,), 0, V, dtype=jnp.int32)
    # force a couple of padding targets to exercise the row-zeroing path
    target = target.at[3].set(padding_idx).at[10].set(padding_idx)

    loss = label_smoothing_loss(x, target, size=size,
                                padding_idx=padding_idx, smoothing=smoothing)
    loss = jax.block_until_ready(loss)

    ref = label_smoothing_ref(x, target, size=size,
                              padding_idx=padding_idx, smoothing=smoothing)
    assert jnp.allclose(loss, ref, rtol=1e-5, atol=1e-5), (loss, ref)

    print("KERNEL_OK")
</pallas_src>

<mosaic_0001>
module attributes {stable_mosaic.version = 11 : i64} {
  func.func @kernel(%arg0: i32, %arg1: i32, %arg2: i32, %arg3: memref<8x32xf32, #tpu.memory_space<vmem>>, %arg4: memref<8x1xi32, #tpu.memory_space<vmem>>, %arg5: memref<1x1x8x32xf32, #tpu.memory_space<vmem>>, %arg6: memref<8x32xf32, #tpu.memory_space<vmem>>) attributes {dimension_semantics = [#tpu.dimension_semantics<parallel>, #tpu.dimension_semantics<arbitrary>, #tpu.dimension_semantics<arbitrary>], iteration_bounds = array<i64: 2, 1, 1>, scalar_prefetch = 0 : i64, scratch_operands = 1 : i64, tpu.core_type = #tpu.core_type<tc>, window_params = [{transform_indices = @transform_0, window_bounds = array<i64: 8, 32>}, {transform_indices = @transform_1, window_bounds = array<i64: 8, 1>}, {transform_indices = @transform_2, window_bounds = array<i64: 1, 1, 8, 32>}]} {
    %c0_i32 = arith.constant 0 : i32
    %0 = arith.cmpi eq, %arg2, %c0_i32 : i32
    %1 = arith.extui %0 : i1 to i32
    %c0_i32_0 = arith.constant 0 : i32
    %2 = arith.cmpi ne, %1, %c0_i32_0 : i32
    scf.if %2 {
      %cst_19 = arith.constant 0.000000e+00 : f32
      %52 = vector.broadcast %cst_19 : f32 to vector<8x32xf32>
      %c0_20 = arith.constant 0 : index
      %c0_21 = arith.constant 0 : index
      %53 = vector.load %arg6[%c0_20, %c0_21] : memref<8x32xf32, #tpu.memory_space<vmem>>, vector<8x32xf32>
      tpu.vector_store %arg6[%c0_20, %c0_21], %52 {strides = array<i32>} : memref<8x32xf32, #tpu.memory_space<vmem>>, vector<8x32xf32>,
    } else {
    }
    %c0 = arith.constant 0 : index
    %c0_1 = arith.constant 0 : index
    %3 = vector.load %arg3[%c0, %c0_1] : memref<8x32xf32, #tpu.memory_space<vmem>>, vector<8x32xf32>
    %c0_2 = arith.constant 0 : index
    %c0_3 = arith.constant 0 : index
    %4 = vector.load %arg4[%c0_2, %c0_3] : memref<8x1xi32, #tpu.memory_space<vmem>>, vector<8x1xi32>
    %5 = tpu.iota {dimensions = array<i32: 1>} : vector<1x32xi32>
    %c32_i32 = arith.constant 32 : i32
    %6 = arith.muli %arg1, %c32_i32 : i32
    %7 = vector.broadcast %6 : i32 to vector<1x32xi32>
    %8 = arith.addi %5, %7 : vector<1x32xi32>
    %c0_i32_4 = arith.constant 0 : i32
    %9 = vector.broadcast %c0_i32_4 : i32 to vector<1x32xi32>
    %10 = arith.cmpi ne, %8, %9 : vector<1x32xi32>
    %cst = arith.constant 0.00333333341 : f32
    %cst_5 = arith.constant 0.000000e+00 : f32
    %11 = vector.broadcast %cst : f32 to vector<1x32xf32>
    %12 = vector.broadcast %cst_5 : f32 to vector<1x32xf32>
    %13 = arith.select %10, %11, %12 : vector<1x32xi1>, vector<1x32xf32>
    %cst_6 = arith.constant -0.0190126076 : f32
    %cst_7 = arith.constant 0.000000e+00 : f32
    %14 = vector.broadcast %cst_6 : f32 to vector<1x32xf32>
    %15 = vector.broadcast %cst_7 : f32 to vector<1x32xf32>
    %16 = arith.select %10, %14, %15 : vector<1x32xi1>, vector<1x32xf32>
    %17 = tpu.iota {dimensions = array<i32: 0>} : vector<8x1xi32>
    %c1_i32 = arith.constant 1 : i32
    %18 = arith.muli %arg0, %c1_i32 : i32
    %19 = arith.addi %18, %arg2 : i32
    %c8_i32 = arith.constant 8 : i32
    %20 = arith.muli %19, %c8_i32 : i32
    %21 = vector.broadcast %20 : i32 to vector<8x1xi32>
    %22 = arith.addi %21, %17 : vector<8x1xi32>
    %c16_i32 = arith.constant 16 : i32
    %23 = vector.broadcast %c16_i32 : i32 to vector<8x1xi32>
    %24 = arith.cmpi slt, %22, %23 : vector<8x1xi32>
    %c0_i32_8 = arith.constant 0 : i32
    %25 = vector.broadcast %c0_i32_8 : i32 to vector<8x1xi32>
    %26 = arith.cmpi ne, %4, %25 : vector<8x1xi32>
    %27 = arith.andi %24, %26 : vector<8x1xi1>
    %28 = vector.broadcast %8 : vector<1x32xi32> to vector<8x32xi32>
    %29 = vector.broadcast %4 : vector<8x1xi32> to vector<8x32xi32>
    %30 = arith.cmpi eq, %28, %29 : vector<8x32xi32>
    %31 = vector.broadcast %13 : vector<1x32xf32> to vector<8x32xf32>
    %32 = arith.mulf %31, %3 : vector<8x32xf32>
    %33 = vector.broadcast %16 : vector<1x32xf32> to vector<8x32xf32>
    %34 = arith.subf %33, %32 : vector<8x32xf32>
    %cst_9 = arith.constant 0.899999976 : f32
    %35 = vector.broadcast %cst_9 : f32 to vector<8x32xf32>
    %36 = arith.mulf %35, %3 : vector<8x32xf32>
    %cst_10 = arith.constant -0.0948244631 : f32
    %37 = vector.broadcast %cst_10 : f32 to vector<8x32xf32>
    %38 = arith.subf %37, %36 : vector<8x32xf32>
    %39 = arith.select %30, %38, %34 : vector<8x32xi1>, vector<8x32xf32>
    %cst_11 = arith.constant 0.000000e+00 : f32
    %40 = vector.shape_cast %27 : vector<8x1xi1> to vector<8x1xi1>
    %41 = vector.broadcast %40 : vector<8x1xi1> to vector<8x32xi1>
    %42 = vector.broadcast %cst_11 : f32 to vector<8x32xf32>
    %43 = arith.select %41, %39, %42 : vector<8x32xi1>, vector<8x32xf32>
    %c0_12 = arith.constant 0 : index
    %c0_13 = arith.constant 0 : index
    %44 = vector.load %arg6[%c0_12, %c0_13] : memref<8x32xf32, #tpu.memory_space<vmem>>, vector<8x32xf32>
    %45 = vector.shape_cast %43 : vector<8x32xf32> to vector<1x8x32xf32>
    %cst_14 = arith.constant dense<0.000000e+00> : vector<8x32xf32>
    %46 = vector.multi_reduction <add>, %45, %cst_14 [0] : vector<1x8x32xf32> to vector<8x32xf32>
    %47 = arith.addf %44, %46 : vector<8x32xf32>
    %c0_15 = arith.constant 0 : index
    %c0_16 = arith.constant 0 : index
    %48 = vector.load %arg6[%c0_15, %c0_16] : memref<8x32xf32, #tpu.memory_space<vmem>>, vector<8x32xf32>
    tpu.vector_store %arg6[%c0_15, %c0_16], %47 {strides = array<i32>} : memref<8x32xf32, #tpu.memory_space<vmem>>, vector<8x32xf32>,
    %c0_i32_17 = arith.constant 0 : i32
    %49 = arith.cmpi eq, %arg2, %c0_i32_17 : i32
    %50 = arith.extui %49 : i1 to i32
    %c0_i32_18 = arith.constant 0 : i32
    %51 = arith.cmpi ne, %50, %c0_i32_18 : i32
    scf.if %51 {
      %c0_19 = arith.constant 0 : index
      %c0_20 = arith.constant 0 : index
      %52 = vector.load %arg6[%c0_19, %c0_20] : memref<8x32xf32, #tpu.memory_space<vmem>>, vector<8x32xf32>
      %53 = vector.shape_cast %52 : vector<8x32xf32> to vector<1x1x8x32xf32>
      %c0_21 = arith.constant 0 : index
      %c0_22 = arith.constant 0 : index
      %c0_23 = arith.constant 0 : index
      %c0_24 = arith.constant 0 : index
      %54 = vector.load %arg5[%c0_21, %c0_22, %c0_23, %c0_24] : memref<1x1x8x32xf32, #tpu.memory_space<vmem>>, vector<1x1x8x32xf32>
      tpu.vector_store %arg5[%c0_21, %c0_22, %c0_23, %c0_24], %53 {strides = array<i32>} : memref<1x1x8x32xf32, #tpu.memory_space<vmem>>, vector<1x1x8x32xf32>,
    } else {
    }
    return
  }
  func.func @transform_0(%arg0: i32, %arg1: i32, %arg2: i32) -> (i32, i32) {
    %c1_i32 = arith.constant 1 : i32
    %0 = arith.muli %arg0, %c1_i32 : i32
    %1 = arith.addi %0, %arg2 : i32
    %c1_i32_0 = arith.constant 1 : i32
    %2 = arith.minsi %1, %c1_i32_0 : i32
    %c0_i32 = arith.constant 0 : i32
    return %2, %arg1 : i32, i32
  }
  func.func @transform_1(%arg0: i32, %arg1: i32, %arg2: i32) -> (i32, i32) {
    %c1_i32 = arith.constant 1 : i32
    %0 = arith.muli %arg0, %c1_i32 : i32
    %1 = arith.addi %0, %arg2 : i32
    %c1_i32_0 = arith.constant 1 : i32
    %2 = arith.minsi %1, %c1_i32_0 : i32
    %c0_i32 = arith.constant 0 : i32
    %c0_i32_1 = arith.constant 0 : i32
    return %2, %c0_i32 : i32, i32
  }
  func.func @transform_2(%arg0: i32, %arg1: i32, %arg2: i32) -> (i32, i32, i32, i32) {
    %c0_i32 = arith.constant 0 : i32
    %c0_i32_0 = arith.constant 0 : i32
    %c0_i32_1 = arith.constant 0 : i32
    return %arg0, %arg1, %c0_i32, %c0_i32_0 : i32, i32, i32, i32
  }
}

</mosaic_0001>

<bundles_post_ra>
// kernel: tpu_custom_call.1
= control target key start
LH: loop header
LB: loop body
LE: loop exit
PB: predicated region body
PF: predicated region fallthrough
CT: control target
= control target key end

     0   :  { %7 = vsyncpa [#allocation4], 0  ;;  %s675_s0 = inlined_call_operand.vmem [shape: f32[16,32], index: 0, kind: input, shape index: {}]   ;;  %s676_s1 = inlined_call_operand.vmem [shape: s32[16,1], index: 1, kind: input, shape index: {}]   ;;  %s677_s2 = inlined_call_operand.hbm [shape: f32[2,1,8,32], index: 2, kind: output, shape index: {}]  }
   0x1   :  { %9 = vsyncpa [#allocation4 + $0x1], 0  ;;  %s556_s9 = smov 0   ;;  %s558_s10 = smov 0  }
   0x2   :  { %s560_s11 = smov 0   ;;  %s562_s12 = smov 0  }
   0x3   :  { %s564_s13 = smov 0   ;;  %s566_s14 = smov 0  }
   0x4 LB: > { %s381_s15 = sadd.s32 4294967295, %s536_s14   ;;  %s382_s16 = sadd.s32 4294967294, %s536_s14   ;;  %s536_s14 = sphi %s566_s14, %s15_s14   ;;  %s532_s13 = sphi %s564_s13, %s684_s13   ;;  %s528_s12 = sphi %s562_s12, %s683_s12   ;;  %s524_s11 = sphi %s560_s11, %s682_s11   ;;  %s520_s10 = sphi %s558_s10, %s681_s10   ;;  %s516_s9 = sphi %s556_s9, %s680_s9  }
   0x5   : > { %s34_s17 = sadd.s32 1, %s532_s13  ;;  %s109_s18 = sadd.s32 1, %s524_s11 }
   0x6   : > { %p36_p0 = scmp.ge.s32.totalorder %s34_s17, 2  ;;  %p119_p1 = scmp.ne.s32.totalorder %s524_s11, %s520_s10 }
   0x7   : > { %p120_p2 = scmp.eq.s32.totalorder %s381_s15, 1  ;;  %p125_p3 = scmp.ne.s32.totalorder %s520_s10, %s516_s9 }
   0x8   : > { %s686_s17 = smov (%p36_p0, %s34_s17), 0  ;;  %p126_p5 = scmp.eq.s32.totalorder %s382_s16, 1 }
   0x9   : > { %p596_p4 = por %p120_p2, %p119_p1  ;;  %s104_s20 = ssub.s32 %s532_s13, %s686_s17 }
   0xa   : > { %p385_p6 = scmp.ge.s32.totalorder %s536_s14, 1  ;;  %p107_p7 = scmp.eq.s32.totalorder %s104_s20, 0 }
   0xb   : > { %p603_p8 = por %p126_p5, %p125_p3  ;;  %p173_p9 = scmp.lt.s32.totalorder %s536_s14, 3 }
   0xc   : > { %s609_s22 = scalar_select %p107_p7, %s524_s11, %s109_s18  }
   0xd   : > { %p174_p10 = pnand %p385_p6, %p173_p9 }
   0xe   : > { %p208_p11 = scmp.lt.s32.totalorder (!%p174_p10), %s528_s12, 1  ;;  %v238_v0 = vlaneseq (!%p174_p10)  ;;  %s395_s23 = sshll.u32 (!%p174_p10), %s528_s12, 3  ;;  %v538_v1 = vmov (!%p174_p10), 0   ;;  %v539_v6 = vmov (!%p174_p10), 0.0   ;;  %vm234_vm1 = vcmask (!%p174_p10), 261120  }
   0xf   : > { %177 = sbr.rel (%p174_p10) target bundleno = 186 (0xba), region = 28  ;;  %457 = vset.pattern.permute.xlu0 (!%p174_p10), %v538_v1  ;;  %v250_v2 = vstv (!%p174_p10), %s395_s23  ;;  %235 = vst.msk [vmem:[#allocation2] sm:$0xff] (!%p174_p10), %vm234_vm1, %v539_v6  ;;  %s204_s4 = sand.u32 (!%p174_p10), 1, %s520_s10  }
  0x10   : > { %v247_v3 = vshrl.u32 (!%p174_p10), %v238_v0, 7  ;;  %v239_v4 = vand.u32 (!%p174_p10), 127, %v238_v0  ;;  %s386_s5 = sshll.u32 (!%p174_p10), %s204_s4, 3  ;;  %s397_s6 = sshll.u32 (!%p174_p10), %s528_s12, 7 }
  0x11   : > { %s206_s7 = scalar_lea.vmem (!%p174_p10), [#allocation3], %s386_s5  ;;  %s627_s18 = scalar_lea.hbm (!%p174_p10), %s677_s2, %s397_s6 }
  0x12   : > { %v251_v5 = vadd.s32 (!%p174_p10), %v250_v2, %v247_v3  ;;  %vm243_vm0 = vcmp.ne.s32.totalorder (!%p174_p10), %v239_v4, 0  ;;  %s295_s8 = sshll.u32 (!%p174_p10), %s206_s7, 4  ;;  %s281_s20 = scalar_lea.sflag (!%p174_p10), [#allocation4], %s204_s4  ;;  %s629_s8 = int_to_ptr.vmem [resolvable:$true] %s295_s8 }
  0x13   : > { %v244_v7 = vsel (!%p174_p10), %vm243_vm0, 0.0033333334, %v539_v6  ;;  %v245_v8 = vsel (!%p174_p10), %vm243_vm0, -0.019012608, %v539_v6  ;;  %s458_s23 = scalar_lea.vmem (!%p174_p10), %s629_s8, 128 }
  0x14   : > { %vm252_vm2 = vcmp.lt.s32.totalorder (!%p174_p10), %v251_v5, 16  ;;  %p459_p12 = scmp.ne.s32.totalorder (!%p174_p10), %s629_s8, %s458_s23 }
  0x16   : > { %s209_s24 = scalar_select %p208_p11, %s528_s12, 1  ;;  %v270_v18 = vld [vmem:[#allocation2] sm:$0xff] }
  0x17   : > { %p460_p13 = pnand %p459_p12, %p596_p4  ;;  %s540_s12 = smov [#allocation3]  }
  0x18   : > { %s688_s24 = smov (!%p208_p11, %s209_s24), 1 }
  0x19   : > { %s390_s25 = sshll.u32 %s688_s24, 3  ;;  %p461_p0 = pneg %p460_p13 }
  0x1a   : > { %s226_s28 = scalar_lea.vmem %s676_s1, %s390_s25  ;;  %s216_s3 = scalar_lea.vmem %s675_s0, %s390_s25 }
  0x1b   : > { %v237_v9 = vld [vmem:[%s226_s28] sm:$0xff]  ;;  %s462_s24 = sshll.u32 %s540_s12, 4  ;;  %s463_s24 = int_to_ptr.vmem [resolvable:$false] %s462_s24 }
  0x1c   : > { %v236_v10 = vld [vmem:[%s216_s3] sm:$0xff]  ;;  %256 = vperm.xlu0 %457, %v237_v9   ;;  %vm253_vm3 = vcmp.ne.s32.totalorder %v237_v9, 0  ;;  %s464_s25 = scalar_lea.vmem %s463_s24, 256  ;;  %p465_p1 = scmp.lt.s32.totalorder %s629_s8, %s463_s24 }
  0x1d   : > { %v259_v11 = vmul.f32 %v244_v7, %v236_v10  ;;  %vm254_vm4 = vmand %vm252_vm2, %vm253_vm3  ;;  %v261_v14 = vmul.f32 0.9, %v236_v10  ;;  %p466_p2 = scmp.lt.s32.totalorder %s464_s25, %s458_s23 }
  0x1e   : > { %v264_v12 = vsel %vm254_vm4, 1, %v538_v1 }
  0x1f   : > { %v260_v13 = vsub.f32 %v245_v8, %v259_v11  ;;  %v262_v15 = vsub.f32 -0.09482446, %v261_v14  ;;  %p467_p3 = por %p466_p2, %p465_p1 }
  0x20   : > { %266 = vperm.xlu0 %457, %v264_v12  }
  0x21   : > { %p468_p5 = pnand %p467_p3, %p461_p0 }
  0x9b   : > { %v257_v16 = vpop.permute.xlu0 %256 }
  0x9c   : > { %vm258_vm5 = vcmp.eq.s32.totalorder %v239_v4, %v257_v16 }
  0x9d   : > { %v263_v17 = vsel %vm258_vm5, %v262_v15, %v260_v13 }
  0x9f   : > { %v267_v19 = vpop.permute.xlu0 %266 }
  0xa0   : > { %vm268_vm6 = vcmp.eq.s32.totalorder %v267_v19, 1 }
  0xa1   : > { %v269_v20 = vsel %vm268_vm6, %v263_v17, 0.0 }
  0xa2   : > { %v272_v21 = vadd.f32 %v270_v18, %v269_v20 }
  0xa4   : > { %274 = vst.msk [vmem:[#allocation2] sm:$0xff] %vm234_vm1, %v272_v21 }
  0xab   : > { %v278_v22 = vld [vmem:[#allocation2] sm:$0xff] }
  0xac   : > { %279 = vst.msk [vmem:[%s206_s7] sm:$0xff] %vm234_vm1, %v278_v22 }
  0xad   : > { %471 = shalt.err (!%p468_p5)
}
  0xae   : > { %s472_s26 = scalar_lea.hbm %s627_s18, 128  ;;  %s476_s29 = scalar_lea.hbm %s677_s2, 256 }
  0xaf   : > { %p473_p6 = scmp.ne.s32.totalorder %s627_s18, %s472_s26  ;;  %p477_p10 = scmp.lt.u32.totalorder %s627_s18, %s677_s2 }
  0xb0   : > { %p478_p11 = scmp.lt.u32.totalorder %s476_s29, %s472_s26  ;;  %p480_p13 = scmp.lt.u32.totalorder %s472_s26, %s627_s18 }
  0xb1   : > { %p474_p7 = pnand %p473_p6, %p596_p4 }
  0xb2   : > { %p479_p12 = por %p478_p11, %p477_p10 }
  0xb3   : > { %p475_p9 = pneg %p474_p7 }
  0xb4   : > { %p481_p0 = por %p480_p13, %p479_p12 }
  0xb6   : > { %p482_p1 = pnand %p481_p0, %p475_p9 }
  0xb8   : > { %485 = shalt.err (!%p482_p1)
}
  0xb9   : > { %400 = dma.vmem_to_hbm [thread:$0]  (%p596_p4), %s629_s8, 128, %s627_s18, %s281_s20  }
  0xba PF: > { %p406_p2 = scmp.ge.s32.totalorder %s536_s14, 2  ;;  %s307_s4 = sand.u32 1, %s516_s9  }
  0xbb   : > { %s308_s5 = scalar_lea.sflag [#allocation4], %s307_s4 }
  0xbc   : > { %p403_p3 = pnand %p406_p2, %p603_p8 }
  0xbe   : > { %511 = dma.done.wait (!%p403_p3), %s308_s5, 128  }
  0xbf   : > { %513 = vsyncadd (!%p403_p3), %s308_s5, 4294967168  ;;  %s15_s14 = sadd.s32 1, %s536_s14   ;;  %s680_s9 = smov %s520_s10 }
  0xc0   : > { %p12_p5 = scmp.ge.s32.totalorder %s15_s14, 4   ;;  %s681_s10 = smov %s524_s11 }
  0xc1   : > { %s682_s11 = smov %s609_s22  ;;  %s683_s12 = smov %s532_s13 }
  0xc2   : > { %s684_s13 = smov %s686_s17  ;;  %14 = sbr.rel (!%p12_p5) target bundleno = 4 (0x4), region = 74 }
  0xc9   :  { %313 = vsyncpa [#allocation4], 1 }
  0xca   :  { %315 = vsyncpa [#allocation4 + $0x1], 1 }

</bundles_post_ra>
